<compile_context>
chip_gen: v6e
topology: v6e:2x2x1
jax: 0.10.0
libtpu: 0.0.40
codegen_flags: <defaults>
</compile_context>

<pallas_src>
import jax
import jax.numpy as jnp
from jax.experimental import pallas as pl
from jax.experimental.pallas import tpu as pltpu


def _round_up(n, m):
    return (n + m - 1) // m * m


_SUBLANE = {4: 8, 2: 16, 1: 32}          # itemsize -> sublane tile
_VMEM_BUDGET = 24 * 1024 * 1024          # double-buffered tile budget (bytes)
_VMEM_LIMIT = 32 * 1024 * 1024           # safe on v5e/v6e/v7x


# --------------------------------------------------------------------------
# Fused kernel: matmul (MXU) + per-class weight-norm scale (VPU/XLU/EUP) + bias
# --------------------------------------------------------------------------
def wn_fused_kernel(x_ref, v_ref, g_ref, b_ref, o_ref):
    # x: (tb, W)  v: (W, tc)  g: (1, tc)  b: (1, tc)  o: (tb, tc)
    v = v_ref[...]
    y = jnp.dot(x_ref[...], v, preferred_element_type=jnp.float32)   # MXU, f32 acc
    vf = v.astype(jnp.float32)
    ssq = jnp.sum(vf * vf, axis=0, keepdims=True)                    # (1, tc) sublane reduce
    s = g_ref[...].astype(jnp.float32) * jax.lax.rsqrt(ssq)          # g / ||v||  (EUP rsqrt)
    o_ref[...] = (y * s + b_ref[...].astype(jnp.float32)).astype(o_ref.dtype)


# --------------------------------------------------------------------------
# One-time parameter preparation (hoisted out of the forward path)
# --------------------------------------------------------------------------
def prepare_params(v, g, bias, *, param_dtype=None):
    """v: (C, W) torch-layout weight_v; g: (C,)/(C,1); bias: (C,)/(1,C).
    Returns (v_t_padded (W, C_pad), g_padded (1, C_pad), bias_padded (1, C_pad), C)."""
    C, W = v.shape
    C_pad = _round_up(C, 128)
    v_t = jnp.transpose(v)                                  # store as (W, C): no in-kernel transpose
    g = jnp.reshape(g, (1, C)).astype(jnp.float32)
    bias = jnp.reshape(bias, (1, C)).astype(jnp.float32)
    if C_pad != C:
        pad_c = C_pad - C
        v_t = jnp.pad(v_t, ((0, 0), (0, pad_c)))
        # padded classes: unit-norm e1 column (rsqrt never sees 0); g/bias = 0
        v_t = v_t.at[0, C:].set(jnp.ones((pad_c,), v_t.dtype))
        g = jnp.pad(g, ((0, 0), (0, pad_c)))
        bias = jnp.pad(bias, ((0, 0), (0, pad_c)))
    if param_dtype is not None:
        v_t = v_t.astype(param_dtype)
    return v_t, g, bias, C


# --------------------------------------------------------------------------
# Tile selection
# --------------------------------------------------------------------------
def _pick_tb(B, sub):
    if B < 256:
        return _round_up(B, sub)          # single small tile, minimal padding
    best_t, best_key = None, None
    for t in (512, 256, 128):
        Bp = _round_up(B, t)
        nb = Bp // t
        # minimise padding, prefer >=2 tiles (v7x dual TC), then bigger tiles
        key = (Bp - B, 0 if nb >= 2 else 1, -t)
        if best_key is None or key < best_key:
            best_t, best_key = t, key
    return best_t


def _vmem_bytes(tb, tc, W, isx, isv, iso):
    # double-buffered x, v, out tiles + g/bias tiles
    return 2 * (tb * W * isx + W * tc * isv + tb * tc * iso) + 4 * tc * 4


def _pick_tiles(B, W, C_pad, isx, isv, iso, sub):
    tb = _pick_tb(B, sub)
    cands = []
    if C_pad <= 2048:
        cands.append(C_pad)
    for c in (1024, 512, 256, 128):
        if c < C_pad and C_pad % c == 0 and c not in cands:
            cands.append(c)
    while True:
        for tc in cands:
            if _vmem_bytes(tb, tc, W, isx, isv, iso) <= _VMEM_BUDGET:
                return tb, tc
        if tb <= sub:
            return tb, cands[-1]          # smallest plan; let the compiler cope
        tb = max(sub, tb // 2)


# --------------------------------------------------------------------------
# Forward pass
# --------------------------------------------------------------------------
def vit_sfda_classifier(x, v_t_pad, g_pad, bias_pad, num_classes,
                        *, out_dtype=jnp.float32):
    """x: (B, W); v_t_pad/g_pad/bias_pad from prepare_params().
    Returns (B, num_classes) logits in out_dtype."""
    B, W = x.shape
    Wv, C_pad = v_t_pad.shape
    assert Wv == W and C_pad % 128 == 0

    isx = jnp.dtype(x.dtype).itemsize
    isv = jnp.dtype(v_t_pad.dtype).itemsize
    iso = jnp.dtype(out_dtype).itemsize
    sub = _SUBLANE.get(isx, 8)

    tb, tc = _pick_tiles(B, W, C_pad, isx, isv, iso, sub)
    B_pad = _round_up(B, tb)
    if B_pad != B:
        x = jnp.pad(x, ((0, B_pad - B), (0, 0)))

    nb = B_pad // tb
    nc = C_pad // tc

    # Redundant-streaming-aware grid order (feedback item 3):
    #   order A (i outer, j inner): x read once, v re-read nb times
    #   order B (j outer, i inner): v read once, x re-read nc times
    bytes_a = B_pad * W * isx + nb * W * C_pad * isv
    bytes_b = nc * B_pad * W * isx + W * C_pad * isv
    swap = (nc > 1) and (bytes_b < bytes_a)

    if not swap:
        grid = (nb, nc)
        x_map = lambda i, j: (i, 0)
        c_map = lambda i, j: (0, j)
        o_map = lambda i, j: (i, j)
        stream_bytes = bytes_a
    else:
        grid = (nc, nb)
        x_map = lambda j, i: (i, 0)
        c_map = lambda j, i: (0, j)
        o_map = lambda j, i: (i, j)
        stream_bytes = bytes_b

    out = pl.pallas_call(
        wn_fused_kernel,
        out_shape=jax.ShapeDtypeStruct((B_pad, C_pad), out_dtype),
        grid=grid,
        in_specs=[
            pl.BlockSpec((tb, W), x_map),
            pl.BlockSpec((W, tc), c_map),
            pl.BlockSpec((1, tc), c_map),
            pl.BlockSpec((1, tc), c_map),
        ],
        out_specs=pl.BlockSpec((tb, tc), o_map),
        compiler_params=pltpu.CompilerParams(
            dimension_semantics=("parallel", "parallel"),
            vmem_limit_bytes=_VMEM_LIMIT),
        cost_estimate=pl.CostEstimate(
            flops=2 * B_pad * W * C_pad,
            transcendentals=nb * nc * tc,      # rsqrt per resident class tile
            bytes_accessed=stream_bytes + B_pad * C_pad * iso + 2 * C_pad * 4),
    )(x, v_t_pad, g_pad, bias_pad)

    return out[:B, :num_classes]


# --------------------------------------------------------------------------
# Deterministic init mirroring the module's __init__
#   fc.weight.data.normal_(0, 0.01) -> v ~ N(0, 0.01)
#   weight_norm init: g = ||v||_row  (so W_eff == v at init)
#   fc.bias.data.fill_(0.0)
# --------------------------------------------------------------------------
def init_params(key, width, class_num):
    v = 0.01 * jax.random.normal(key, (class_num, width), dtype=jnp.float32)
    g = jnp.sqrt(jnp.sum(v * v, axis=1, keepdims=True))     # (C, 1)
    b = jnp.zeros((class_num,), dtype=jnp.float32)
    return v, g, b


if __name__ == "__main__":
    key = jax.random.PRNGKey(0)
    k_x, k_p = jax.random.split(key)

    # Small shapes consistent with the module (width = feature dim, class_num outputs)
    B, width, class_num = 8, 32, 16
    x = jax.random.normal(k_x, (B, width), dtype=jnp.float32)
    v, g, b = init_params(k_p, width, class_num)

    # ---- f32 path (exact semantics) -------------------------------------
    v_t_p, g_p, b_p, C = prepare_params(v, g, b)
    out = vit_sfda_classifier(x, v_t_p, g_p, b_p, C)
    out = jax.block_until_ready(out)

    # reference in plain JAX (weight_norm linear)
    w_eff = v * (g / jnp.linalg.norm(v, axis=1, keepdims=True))
    ref = x @ w_eff.T + b[None, :]
    assert out.shape == (B, class_num)
    assert jnp.allclose(out, ref, atol=1e-5, rtol=1e-5)

    # ---- bf16 operand fast path (cast once outside kernel, f32 accum) ---
    v_t_bf, g_bf, b_bf, _ = prepare_params(v, g, b, param_dtype=jnp.bfloat16)
    out_bf = vit_sfda_classifier(x.astype(jnp.bfloat16), v_t_bf, g_bf, b_bf, C)
    out_bf = jax.block_until_ready(out_bf)
    assert jnp.allclose(out_bf, ref, atol=5e-2, rtol=5e-2)

    print("KERNEL_OK")
</pallas_src>

<mosaic_0001>
module attributes {stable_mosaic.version = 11 : i64} {
  func.func @wn_fused_kernel(%arg0: i32, %arg1: i32, %arg2: memref<8x32xf32, #tpu.memory_space<vmem>>, %arg3: memref<32x128xf32, #tpu.memory_space<vmem>>, %arg4: memref<1x128xf32, #tpu.memory_space<vmem>>, %arg5: memref<1x128xf32, #tpu.memory_space<vmem>>, %arg6: memref<8x128xf32, #tpu.memory_space<vmem>>) attributes {dimension_semantics = [#tpu.dimension_semantics<parallel>, #tpu.dimension_semantics<parallel>], iteration_bounds = array<i64: 1, 1>, scalar_prefetch = 0 : i64, scratch_operands = 0 : i64, tpu.core_type = #tpu.core_type<tc>, window_params = [{transform_indices = @transform_0, window_bounds = array<i64: 8, 32>}, {transform_indices = @transform_1, window_bounds = array<i64: 32, 128>}, {transform_indices = @transform_2, window_bounds = array<i64: 1, 128>}, {transform_indices = @transform_3, window_bounds = array<i64: 1, 128>}, {transform_indices = @transform_4, window_bounds = array<i64: 8, 128>}]} {
    %c0 = arith.constant 0 : index
    %c0_0 = arith.constant 0 : index
    %0 = vector.load %arg3[%c0, %c0_0] : memref<32x128xf32, #tpu.memory_space<vmem>>, vector<32x128xf32>
    %c0_1 = arith.constant 0 : index
    %c0_2 = arith.constant 0 : index
    %1 = vector.load %arg2[%c0_1, %c0_2] : memref<8x32xf32, #tpu.memory_space<vmem>>, vector<8x32xf32>
    %cst = arith.constant dense<0.000000e+00> : vector<8x128xf32>
    %2 = tpu.matmul %1, %0, %cst {dimension_numbers = #tpu.dot_dimension_numbers<[1], [0], [0], [1], [0, 0, 1, 1], [], []>} : vector<8x32xf32>, vector<32x128xf32>, vector<8x128xf32> -> vector<8x128xf32>
    %3 = arith.mulf %0, %0 : vector<32x128xf32>
    %cst_3 = arith.constant dense<0.000000e+00> : vector<128xf32>
    %4 = vector.multi_reduction <add>, %3, %cst_3 [0] : vector<32x128xf32> to vector<128xf32>
    %5 = vector.shape_cast %4 : vector<128xf32> to vector<1x128xf32>
    %c0_4 = arith.constant 0 : index
    %c0_5 = arith.constant 0 : index
    %6 = vector.load %arg4[%c0_4, %c0_5] : memref<1x128xf32, #tpu.memory_space<vmem>>, vector<1x128xf32>
    %7 = math.rsqrt %5 : vector<1x128xf32>
    %8 = arith.mulf %6, %7 : vector<1x128xf32>
    %9 = vector.broadcast %8 : vector<1x128xf32> to vector<8x128xf32>
    %10 = arith.mulf %2, %9 : vector<8x128xf32>
    %c0_6 = arith.constant 0 : index
    %c0_7 = arith.constant 0 : index
    %11 = vector.load %arg5[%c0_6, %c0_7] : memref<1x128xf32, #tpu.memory_space<vmem>>, vector<1x128xf32>
    %12 = vector.broadcast %11 : vector<1x128xf32> to vector<8x128xf32>
    %13 = arith.addf %10, %12 : vector<8x128xf32>
    %c0_8 = arith.constant 0 : index
    %c0_9 = arith.constant 0 : index
    %14 = vector.load %arg6[%c0_8, %c0_9] : memref<8x128xf32, #tpu.memory_space<vmem>>, vector<8x128xf32>
    tpu.vector_store %arg6[%c0_8, %c0_9], %13 {strides = array<i32>} : memref<8x128xf32, #tpu.memory_space<vmem>>, vector<8x128xf32>,
    return
  }
  func.func @transform_0(%arg0: i32, %arg1: i32) -> (i32, i32) {
    %c0_i32 = arith.constant 0 : i32
    %c0_i32_0 = arith.constant 0 : i32
    return %arg0, %c0_i32 : i32, i32
  }
  func.func @transform_1(%arg0: i32, %arg1: i32) -> (i32, i32) {
    %c0_i32 = arith.constant 0 : i32
    %c0_i32_0 = arith.constant 0 : i32
    return %c0_i32, %arg1 : i32, i32
  }
  func.func @transform_2(%arg0: i32, %arg1: i32) -> (i32, i32) {
    %c0_i32 = arith.constant 0 : i32
    %c0_i32_0 = arith.constant 0 : i32
    return %c0_i32, %arg1 : i32, i32
  }
  func.func @transform_3(%arg0: i32, %arg1: i32) -> (i32, i32) {
    %c0_i32 = arith.constant 0 : i32
    %c0_i32_0 = arith.constant 0 : i32
    return %c0_i32, %arg1 : i32, i32
  }
  func.func @transform_4(%arg0: i32, %arg1: i32) -> (i32, i32) {
    %c0_i32 = arith.constant 0 : i32
    return %arg0, %arg1 : i32, i32
  }
}

</mosaic_0001>

<bundles_post_ra>
// kernel: tpu_custom_call.1
= control target key start
LH: loop header
LB: loop body
LE: loop exit
PB: predicated region body
PF: predicated region fallthrough
CT: control target
= control target key end

     0   :  { %9 = vsyncpa [#allocation3], 0  ;;  %s311_s0 = inlined_call_operand.hbm [shape: f32[8,32], index: 0, kind: input, shape index: {}]   ;;  %s312_s1 = inlined_call_operand.hbm [shape: f32[32,128], index: 1, kind: input, shape index: {}]   ;;  %s313_s2 = inlined_call_operand.vmem [shape: f32[1,128], index: 2, kind: input, shape index: {}]   ;;  %s314_s3 = inlined_call_operand.vmem [shape: f32[1,128], index: 3, kind: input, shape index: {}]   ;;  %s315_s4 = inlined_call_operand.hbm [shape: f32[8,128], index: 4, kind: output, shape index: {}]  }
   0x1   :  { %10 = vsyncpa [#allocation6], 0 }
   0x2   :  { %11 = vsyncpa [#allocation4], 0  ;;  %s264_s15 = smov [#allocation2]   ;;  %s265_s17 = smov [#allocation5]  }
   0x3   :  { %s18_s16 = sshll.u32 %s264_s15, 4  ;;  %s27_s18 = sshll.u32 %s265_s17, 4  ;;  %s19_s16 = int_to_ptr.vmem [resolvable:$true] %s18_s16  ;;  %s28_s18 = int_to_ptr.vmem [resolvable:$true] %s27_s18 }
   0x4   :  { %s206_s19 = scalar_lea.vmem %s19_s16, 128  ;;  %p211_p1 = scmp.lt.s32.totalorder %s19_s16, %s19_s16 }
   0x5   :  { %p207_p0 = scmp.ne.s32.totalorder %s19_s16, %s206_s19  ;;  %p212_p2 = scmp.lt.s32.totalorder %s206_s19, %s206_s19 }
   0x7   :  { %p213_p3 = por %p212_p2, %p211_p1 }
   0x9   :  { %p214_p4 = pnand %p213_p3, %p207_p0 }
   0xb   :  { %217 = shalt.err (!%p214_p4)
}
   0xc   :  { %21 = dma.hbm_to_vmem [thread:$0]  %s311_s0, 128, %s19_s16, [#allocation3]  }
   0xd   :  { %s226_s22 = scalar_lea.vmem %s28_s18, 512  ;;  %p231_p6 = scmp.lt.s32.totalorder %s28_s18, %s28_s18 }
   0xe   :  { %p227_p5 = scmp.ne.s32.totalorder %s28_s18, %s226_s22  ;;  %p232_p7 = scmp.lt.s32.totalorder %s226_s22, %s226_s22 }
  0x10   :  { %p233_p8 = por %p232_p7, %p231_p6 }
  0x12   :  { %p234_p9 = pnand %p233_p8, %p227_p5 }
  0x14   :  { %237 = shalt.err (!%p234_p9)
}
  0x15   :  { %s266_s23 = smov 128   ;;  %s267_s24 = smov 8  }
  0x16   :  { %33 = dma.hbm_to_vmem [thread:$0]  %s312_s1, 512, %s28_s18, [#allocation6], %s266_s23, %s266_s23, %s267_s24  }
  0x17   :  { %258 = dma.done.wait [#allocation3], 128  }
  0x18   :  { %259 = vsyncadd [#allocation3], 4294967168 }
  0x19   :  { %260 = dma.done.wait [#allocation6], 512  }
  0x1a   :  { %261 = vsyncadd [#allocation6], 4294966784  ;;  %v268_v0 = vmov 0.0   ;;  %vm269_vm0 = vmmov 0   ;;  %v47_v1 = vld [vmem:[#allocation5 + $0x18] sm:$0xff]  ;;  %v46_v2 = vld [vmem:[#allocation5 + $0x10] sm:$0xff]  ;;  %v140_v19 = vlaneseq }
  0x1b   :  { %178 = vmatprep.subr.mxu0 %v268_v0  ;;  %186 = vmatprep.mubr.msk.f32.mxu0 %vm269_vm0, %v268_v0  ;;  %v45_v3 = vld [vmem:[#allocation5 + $0x8] sm:$0xff]  ;;  %v44_v5 = vld [vmem:[#allocation5] sm:$0xff]  ;;  %v125_v6 = vmul.f32 %v46_v2, %v46_v2  ;;  %v126_v8 = vmul.f32 %v47_v1, %v47_v1  ;;  %v48_v10 = vld [vmem:[#allocation2] sm:$0xff]  ;;  %vm49_vm1 = vcmask 261120   ;;  %s270_s29 = smov [#allocation7]  }
  0x1c   :  { %179 = vmatpush3.msra.mxu0 %v47_v1  ;;  %v124_v4 = vmul.f32 %v45_v3, %v45_v3  ;;  %v123_v7 = vmul.f32 %v44_v5, %v44_v5  ;;  %v141_v20 = vshrl.u32 %v140_v19, 7  ;;  %v136_v22 = vld [vmem:[%s313_s2] sm:$0x1]  ;;  %s161_s30 = sshll.u32 %s270_s29, 4  ;;  %s162_s30 = int_to_ptr.vmem [resolvable:$true] %s161_s30 }
  0x1d   :  { %180 = vmatprep.subr.mxu0 %v268_v0  ;;  %v172_v27 = vld [vmem:[%s314_s3] ss:$0 sm:$0xff]  ;;  %s238_s5 = scalar_lea.vmem %s162_s30, 128  ;;  %p243_p11 = scmp.lt.s32.totalorder %s162_s30, %s162_s30 }
  0x1e   :  { %181 = vmatpush3.msra.mxu0 %v46_v2  ;;  %v127_v9 = vadd.f32 %v124_v4, %v123_v7  ;;  %v142_v24 = vsub.s32 0, %v141_v20  ;;  %p239_p10 = scmp.ne.s32.totalorder %s162_s30, %s238_s5  ;;  %p244_p12 = scmp.lt.s32.totalorder %s238_s5, %s238_s5 }
  0x1f   :  { %182 = vmatprep.subr.mxu0 %v268_v0 }
  0x20   :  { %183 = vmatpush3.msra.mxu0 %v45_v3  ;;  %v128_v11 = vadd.f32 %v127_v9, %v125_v6  ;;  %p245_p13 = por %p244_p12, %p243_p11 }
  0x21   :  { %184 = vmatprep.subr.mxu0 %v268_v0 }
  0x22   :  { %185 = vmatpush3.msra.mxu0 %v44_v5  ;;  %v129_v12 = vadd.f32 %v128_v11, %v126_v8  ;;  %p246_p0 = pnand %p245_p13, %p239_p10 }
  0x23   :  { %187 = vmatmul.mubr.msk.f32.vlgmr.msra.gmra.mxu0 %vm49_vm1, %v48_v10 }
  0x24   :  { %v130_v13 = vrot.slane %v129_v12, 4 }
  0x26   :  { %v131_v14 = vadd.f32 %v130_v13, %v129_v12 }
  0x28   :  { %v132_v15 = vrot.slane %v131_v14, 2 }
  0x2a   :  { %v133_v16 = vadd.f32 %v132_v15, %v131_v14 }
  0x2c   :  { %v134_v17 = vrot.slane %v133_v16, 1 }
  0x2e   :  { %v135_v18 = vadd.f32 %v134_v17, %v133_v16 }
  0x30   :  { %196 = vrsqrt.f32 %v135_v18 }
  0x3d   :  { %v197_v21 = vpop.eup %196 }
  0x3e   :  { %v138_v23 = vmul.f32 %v197_v21, %v136_v22 }
  0x40   :  { %v143_v25 = vrot.slane %v138_v23, %v142_v24 }
  0xe3   :  { %v119_v26 = vpop.f32.mrf.mxu0 }
  0xe4   :  { %v145_v28 = vmul.f32 %v143_v25, %v119_v26 }
  0xe5   :  { %v188_v29 = vpop.f32.mrf.mxu0 }
  0xe6   :  { %v153_v30 = vadd.f32 %v172_v27, %v145_v28 }
  0xe8   :  { %154 = vst [vmem:[#allocation7] sm:$0xff] %v153_v30 }
  0xe9   :  { %249 = shalt.err (!%p246_p0)
}
  0xea   :  { %164 = dma.vmem_to_hbm [thread:$0]  %s162_s30, 128, %s315_s4, [#allocation4]  }
  0xeb   :  { %262 = dma.done.wait [#allocation4], 128  }
  0xec   :  { %263 = vsyncadd [#allocation4], 4294967168 }
  0xed   :  { %168 = vsyncpa [#allocation3], 1 }
  0xee   :  { %169 = vsyncpa [#allocation6], 1 }
  0xef   :  { %170 = vsyncpa [#allocation4], 1 }

</bundles_post_ra>
